<compile_context>
chip_gen: v6e
topology: v6e:2x2x1
jax: 0.10.0
libtpu: 0.0.40
codegen_flags: <defaults>
</compile_context>

<pallas_src>
import math
import functools

import jax
import jax.numpy as jnp
from jax import lax
from jax.experimental import pallas as pl
from jax.experimental.pallas import tpu as pltpu


def _attention_head_kernel(x_ref, w_ref, b_ref, o_ref, *, matmul_dtype):
    """One grid step == one batch element.

    x_ref : (T, E)      w_ref : (3, E, H)     b_ref : (3, 1, H)    o_ref : (T, H)
    """
    x = x_ref[...].astype(matmul_dtype)                      # cast once (hoisted)

    # Lane-aligned Q/K/V projection: three MXU pushes, weight indexed on the
    # leading (non-lane) axis -> no XLU relayout, no misaligned VMEM copies.
    wq = w_ref[0].astype(matmul_dtype)
    wk = w_ref[1].astype(matmul_dtype)
    wv = w_ref[2].astype(matmul_dtype)

    q = jnp.dot(x, wq, preferred_element_type=jnp.float32) + b_ref[0]   # (T, H) f32
    k = jnp.dot(x, wk, preferred_element_type=jnp.float32) + b_ref[1]
    v = jnp.dot(x, wv, preferred_element_type=jnp.float32) + b_ref[2]

    H = q.shape[-1]
    scale = 1.0 / math.sqrt(float(H))

    # Casts for the attention matmuls, emitted once per grid step.
    qm = q.astype(matmul_dtype)
    km = k.astype(matmul_dtype)
    vm = v.astype(matmul_dtype)

    # scores = q @ k^T with the transpose folded into the MXU operand.
    s = lax.dot_general(
        qm, km,
        dimension_numbers=(((1,), (1,)), ((), ())),
        preferred_element_type=jnp.float32,
    ) * scale                                                 # (T, T) f32

    # Numerically stable softmax, kept strictly in f32 (VPU/EUP); denominator
    # via the EUP approximate reciprocal (separate bundle slot, ~free).
    m = jnp.max(s, axis=-1, keepdims=True)
    e = jnp.exp(s - m)
    p = e * pl.reciprocal(jnp.sum(e, axis=-1, keepdims=True), approx=True)

    o = jnp.dot(p.astype(matmul_dtype), vm, preferred_element_type=jnp.float32)
    o_ref[...] = o.astype(o_ref.dtype)                        # (T, H)


@functools.partial(jax.jit, static_argnames=("matmul_dtype",))
def attention_head(x, w_qkv, b_qkv, *, matmul_dtype=jnp.bfloat16):
    """x: (B, T, E) f32.  w_qkv: (E, 3H).  b_qkv: (3H,).  Returns (B, T, H) f32."""
    B, T, E = x.shape
    H = w_qkv.shape[1] // 3
    # Sublane alignment of the per-batch row tile (review correctness note).
    assert T % 8 == 0, f"T={T} must be a multiple of 8 (sublane alignment)"

    # Stack the fused Linear weight/bias into lane-aligned per-chunk slabs.
    # Column layout of w_qkv is [q | k | v], so reshape(E, 3, H) separates them.
    w_stacked = jnp.transpose(w_qkv.reshape(E, 3, H), (1, 0, 2))   # (3, E, H)
    b_stacked = b_qkv.reshape(3, 1, H).astype(jnp.float32)         # (3, 1, H)

    kernel = functools.partial(_attention_head_kernel, matmul_dtype=matmul_dtype)

    itemsize = jnp.dtype(matmul_dtype).itemsize
    cost = pl.CostEstimate(
        flops=2 * B * T * E * 3 * H          # QKV projection
        + 2 * B * T * T * H                  # q @ k^T
        + 2 * B * T * T * H,                 # p @ v
        transcendentals=B * T * T + B * T,   # exp + reciprocal
        bytes_accessed=(B * T * E + 3 * E * H) * itemsize
        + 3 * H * 4
        + B * T * H * 4,
    )

    out = pl.pallas_call(
        kernel,
        out_shape=jax.ShapeDtypeStruct((B, T, H), jnp.float32),
        grid=(B,),
        in_specs=[
            pl.BlockSpec((None, T, E), lambda b: (b, 0, 0)),     # per-batch x tile
            pl.BlockSpec((3, E, H), lambda b: (0, 0, 0)),        # weights (resident)
            pl.BlockSpec((3, 1, H), lambda b: (0, 0, 0)),        # bias (resident)
        ],
        out_specs=pl.BlockSpec((None, T, H), lambda b: (b, 0, 0)),
        compiler_params=pltpu.CompilerParams(
            dimension_semantics=("parallel",),        # megacore sharding on v7x
            vmem_limit_bytes=32 * 1024 * 1024,        # explicit VMEM budget + headroom
        ),
        cost_estimate=cost,
    )(x, w_stacked, b_stacked)

    return out


def _reference(x, w_qkv, b_qkv):
    """Pure-JAX reference of the intended PyTorch semantics."""
    H = w_qkv.shape[1] // 3
    qkv = jnp.einsum("bte,ef->btf", x, w_qkv) + b_qkv
    q, k, v = qkv[..., :H], qkv[..., H:2 * H], qkv[..., 2 * H:]
    scores = jnp.einsum("bqd,bkd->bqk", q, k) / jnp.sqrt(jnp.float32(H))
    p = jax.nn.softmax(scores, axis=-1)
    return jnp.einsum("bqk,bkd->bqd", p, v)


if __name__ == "__main__":
    # Small, module-consistent shapes.
    B, T, n_embd, n_headd = 2, 8, 32, 16

    key = jax.random.PRNGKey(0)
    kx, kw, kb = jax.random.split(key, 3)

    # Deterministic parameter init (PyTorch Linear-style uniform bound).
    bound = 1.0 / math.sqrt(n_embd)
    w_qkv = jax.random.uniform(kw, (n_embd, 3 * n_headd), jnp.float32, -bound, bound)
    b_qkv = jax.random.uniform(kb, (3 * n_headd,), jnp.float32, -bound, bound)

    x = jax.random.normal(kx, (B, T, n_embd), jnp.float32)

    ref = _reference(x, w_qkv, b_qkv)

    # Default path: bf16 MXU operands, f32 accumulation & softmax (v6e/v7x fast path).
    out_bf16 = jax.block_until_ready(attention_head(x, w_qkv, b_qkv))
    assert out_bf16.shape == (B, T, n_headd), out_bf16.shape
    assert jnp.allclose(out_bf16, ref, atol=2e-2, rtol=2e-2), \
        f"bf16 max abs diff {jnp.max(jnp.abs(out_bf16 - ref))}"

    # f32 MXU operands (strict-parity path; approx reciprocal only extra error).
    out_f32 = jax.block_until_ready(
        attention_head(x, w_qkv, b_qkv, matmul_dtype=jnp.float32))
    assert jnp.allclose(out_f32, ref, atol=1e-3, rtol=1e-3), \
        f"f32 max abs diff {jnp.max(jnp.abs(out_f32 - ref))}"

    print("KERNEL_OK")
</pallas_src>

<mosaic_0001>
module attributes {stable_mosaic.version = 11 : i64} {
  func.func @_attention_head_kernel(%arg0: i32, %arg1: memref<1x8x32xf32, #tpu.memory_space<vmem>>, %arg2: memref<3x32x16xf32, #tpu.memory_space<vmem>>, %arg3: memref<3x1x16xf32, #tpu.memory_space<vmem>>, %arg4: memref<1x8x16xf32, #tpu.memory_space<vmem>>) attributes {dimension_semantics = [#tpu.dimension_semantics<parallel>], iteration_bounds = array<i64: 2>, scalar_prefetch = 0 : i64, scratch_operands = 0 : i64, tpu.core_type = #tpu.core_type<tc>, window_params = [{transform_indices = @transform_0, window_bounds = array<i64: 1, 8, 32>}, {pipeline_mode = #tpu.pipeline_mode<synchronous>, transform_indices = @transform_1, window_bounds = array<i64: 3, 32, 16>}, {pipeline_mode = #tpu.pipeline_mode<synchronous>, transform_indices = @transform_2, window_bounds = array<i64: 3, 1, 16>}, {transform_indices = @transform_3, window_bounds = array<i64: 1, 8, 16>}]} {
    %c0 = arith.constant 0 : index
    %c0_0 = arith.constant 0 : index
    %c0_1 = arith.constant 0 : index
    %0 = vector.load %arg1[%c0, %c0_0, %c0_1] : memref<1x8x32xf32, #tpu.memory_space<vmem>>, vector<1x8x32xf32>
    %1 = vector.shape_cast %0 : vector<1x8x32xf32> to vector<8x32xf32>
    %2 = arith.truncf %1 : vector<8x32xf32> to vector<8x32xbf16>
    %c0_2 = arith.constant 0 : index
    %c0_3 = arith.constant 0 : index
    %c0_4 = arith.constant 0 : index
    %3 = vector.load %arg2[%c0_2, %c0_3, %c0_4] : memref<3x32x16xf32, #tpu.memory_space<vmem>>, vector<1x32x16xf32>
    %4 = vector.shape_cast %3 : vector<1x32x16xf32> to vector<32x16xf32>
    %5 = arith.truncf %4 : vector<32x16xf32> to vector<32x16xbf16>
    %c1 = arith.constant 1 : index
    %c0_5 = arith.constant 0 : index
    %c0_6 = arith.constant 0 : index
    %6 = vector.load %arg2[%c1, %c0_5, %c0_6] : memref<3x32x16xf32, #tpu.memory_space<vmem>>, vector<1x32x16xf32>
    %7 = vector.shape_cast %6 : vector<1x32x16xf32> to vector<32x16xf32>
    %8 = arith.truncf %7 : vector<32x16xf32> to vector<32x16xbf16>
    %c2 = arith.constant 2 : index
    %c0_7 = arith.constant 0 : index
    %c0_8 = arith.constant 0 : index
    %9 = vector.load %arg2[%c2, %c0_7, %c0_8] : memref<3x32x16xf32, #tpu.memory_space<vmem>>, vector<1x32x16xf32>
    %10 = vector.shape_cast %9 : vector<1x32x16xf32> to vector<32x16xf32>
    %11 = arith.truncf %10 : vector<32x16xf32> to vector<32x16xbf16>
    %cst = arith.constant dense<0.000000e+00> : vector<8x16xf32>
    %12 = tpu.matmul %2, %5, %cst {dimension_numbers = #tpu.dot_dimension_numbers<[1], [0], [0], [1], [0, 0, 1, 1], [], []>} : vector<8x32xbf16>, vector<32x16xbf16>, vector<8x16xf32> -> vector<8x16xf32>
    %c0_9 = arith.constant 0 : index
    %c0_10 = arith.constant 0 : index
    %c0_11 = arith.constant 0 : index
    %13 = vector.load %arg3[%c0_9, %c0_10, %c0_11] : memref<3x1x16xf32, #tpu.memory_space<vmem>>, vector<1x1x16xf32>
    %14 = vector.shape_cast %13 : vector<1x1x16xf32> to vector<1x16xf32>
    %15 = vector.broadcast %14 : vector<1x16xf32> to vector<8x16xf32>
    %16 = arith.addf %12, %15 : vector<8x16xf32>
    %cst_12 = arith.constant dense<0.000000e+00> : vector<8x16xf32>
    %17 = tpu.matmul %2, %8, %cst_12 {dimension_numbers = #tpu.dot_dimension_numbers<[1], [0], [0], [1], [0, 0, 1, 1], [], []>} : vector<8x32xbf16>, vector<32x16xbf16>, vector<8x16xf32> -> vector<8x16xf32>
    %c1_13 = arith.constant 1 : index
    %c0_14 = arith.constant 0 : index
    %c0_15 = arith.constant 0 : index
    %18 = vector.load %arg3[%c1_13, %c0_14, %c0_15] : memref<3x1x16xf32, #tpu.memory_space<vmem>>, vector<1x1x16xf32>
    %19 = vector.shape_cast %18 : vector<1x1x16xf32> to vector<1x16xf32>
    %20 = vector.broadcast %19 : vector<1x16xf32> to vector<8x16xf32>
    %21 = arith.addf %17, %20 : vector<8x16xf32>
    %cst_16 = arith.constant dense<0.000000e+00> : vector<8x16xf32>
    %22 = tpu.matmul %2, %11, %cst_16 {dimension_numbers = #tpu.dot_dimension_numbers<[1], [0], [0], [1], [0, 0, 1, 1], [], []>} : vector<8x32xbf16>, vector<32x16xbf16>, vector<8x16xf32> -> vector<8x16xf32>
    %c2_17 = arith.constant 2 : index
    %c0_18 = arith.constant 0 : index
    %c0_19 = arith.constant 0 : index
    %23 = vector.load %arg3[%c2_17, %c0_18, %c0_19] : memref<3x1x16xf32, #tpu.memory_space<vmem>>, vector<1x1x16xf32>
    %24 = vector.shape_cast %23 : vector<1x1x16xf32> to vector<1x16xf32>
    %25 = vector.broadcast %24 : vector<1x16xf32> to vector<8x16xf32>
    %26 = arith.addf %22, %25 : vector<8x16xf32>
    %27 = arith.truncf %16 : vector<8x16xf32> to vector<8x16xbf16>
    %28 = arith.truncf %21 : vector<8x16xf32> to vector<8x16xbf16>
    %29 = arith.truncf %26 : vector<8x16xf32> to vector<8x16xbf16>
    %cst_20 = arith.constant dense<0.000000e+00> : vector<8x8xf32>
    %30 = tpu.matmul %27, %28, %cst_20 {dimension_numbers = #tpu.dot_dimension_numbers<[1], [1], [0], [0], [0, 0, 1, 0], [], []>} : vector<8x16xbf16>, vector<8x16xbf16>, vector<8x8xf32> -> vector<8x8xf32>
    %cst_21 = arith.constant 2.500000e-01 : f32
    %31 = vector.broadcast %cst_21 : f32 to vector<8x8xf32>
    %32 = arith.mulf %30, %31 : vector<8x8xf32>
    %cst_22 = arith.constant dense<0xFF800000> : vector<8xf32>
    %33 = vector.multi_reduction <maximumf>, %32, %cst_22 [1] : vector<8x8xf32> to vector<8xf32>
    %34 = vector.shape_cast %33 : vector<8xf32> to vector<8x1xf32>
    %35 = vector.broadcast %34 : vector<8x1xf32> to vector<8x8xf32>
    %36 = arith.subf %32, %35 : vector<8x8xf32>
    %37 = math.exp %36 : vector<8x8xf32>
    %cst_23 = arith.constant dense<0.000000e+00> : vector<8xf32>
    %38 = vector.multi_reduction <add>, %37, %cst_23 [1] : vector<8x8xf32> to vector<8xf32>
    %39 = vector.shape_cast %38 : vector<8xf32> to vector<8x1xf32>
    %40 = tpu.reciprocal %39 {approx = true} : vector<8x1xf32> -> vector<8x1xf32>
    %41 = vector.broadcast %40 : vector<8x1xf32> to vector<8x8xf32>
    %42 = arith.mulf %37, %41 : vector<8x8xf32>
    %43 = arith.truncf %42 : vector<8x8xf32> to vector<8x8xbf16>
    %cst_24 = arith.constant dense<0.000000e+00> : vector<8x16xf32>
    %44 = tpu.matmul %43, %29, %cst_24 {dimension_numbers = #tpu.dot_dimension_numbers<[1], [0], [0], [1], [0, 0, 1, 1], [], []>} : vector<8x8xbf16>, vector<8x16xbf16>, vector<8x16xf32> -> vector<8x16xf32>
    %c0_25 = arith.constant 0 : index
    %c0_26 = arith.constant 0 : index
    %c0_27 = arith.constant 0 : index
    %45 = vector.load %arg4[%c0_25, %c0_26, %c0_27] : memref<1x8x16xf32, #tpu.memory_space<vmem>>, vector<1x8x16xf32>
    %46 = vector.shape_cast %45 : vector<1x8x16xf32> to vector<8x16xf32>
    %47 = vector.shape_cast %44 : vector<8x16xf32> to vector<1x8x16xf32>
    tpu.vector_store %arg4[%c0_25, %c0_26, %c0_27], %47 {strides = array<i32>} : memref<1x8x16xf32, #tpu.memory_space<vmem>>, vector<1x8x16xf32>,
    return
  }
  func.func @transform_0(%arg0: i32) -> (i32, i32, i32) {
    %c0_i32 = arith.constant 0 : i32
    %c0_i32_0 = arith.constant 0 : i32
    %c0_i32_1 = arith.constant 0 : i32
    return %arg0, %c0_i32, %c0_i32_0 : i32, i32, i32
  }
  func.func @transform_1(%arg0: i32) -> (i32, i32, i32) {
    %c0_i32 = arith.constant 0 : i32
    %c0_i32_0 = arith.constant 0 : i32
    %c0_i32_1 = arith.constant 0 : i32
    %c0_i32_2 = arith.constant 0 : i32
    return %c0_i32, %c0_i32_0, %c0_i32_1 : i32, i32, i32
  }
  func.func @transform_2(%arg0: i32) -> (i32, i32, i32) {
    %c0_i32 = arith.constant 0 : i32
    %c0_i32_0 = arith.constant 0 : i32
    %c0_i32_1 = arith.constant 0 : i32
    %c0_i32_2 = arith.constant 0 : i32
    return %c0_i32, %c0_i32_0, %c0_i32_1 : i32, i32, i32
  }
  func.func @transform_3(%arg0: i32) -> (i32, i32, i32) {
    %c0_i32 = arith.constant 0 : i32
    %c0_i32_0 = arith.constant 0 : i32
    %c0_i32_1 = arith.constant 0 : i32
    return %arg0, %c0_i32, %c0_i32_0 : i32, i32, i32
  }
}

</mosaic_0001>

<bundles_post_ra>
// kernel: attention_head.1
= control target key start
LH: loop header
LB: loop body
LE: loop exit
PB: predicated region body
PF: predicated region fallthrough
CT: control target
= control target key end

     0   :  { %8 = vsyncpa [#allocation3], 0  ;;  %s886_s0 = inlined_call_operand.vmem [shape: f32[2,8,32], index: 0, kind: input, shape index: {}]   ;;  %s887_s1 = inlined_call_operand.vmem [shape: f32[3,32,16], index: 1, kind: input, shape index: {}]   ;;  %s888_s2 = inlined_call_operand.vmem [shape: f32[3,1,16], index: 2, kind: input, shape index: {}]   ;;  %s889_s3 = inlined_call_operand.hbm [shape: f32[2,8,16], index: 3, kind: output, shape index: {}]  }
   0x1   :  { %10 = vsyncpa [#allocation3 + $0x1], 0  ;;  %s728_s12 = smov 0   ;;  %s730_s13 = smov 0  }
   0x2   :  { %s732_s14 = smov 0   ;;  %s734_s15 = smov 0  }
   0x3 LB: > { %s749_s16 = sadd.s32 4294967295, %s703_s15   ;;  %s521_s17 = sadd.s32 4294967294, %s703_s15   ;;  %s703_s15 = sphi %s734_s15, %s895_s15   ;;  %s699_s14 = sphi %s732_s14, %s894_s14   ;;  %s695_s13 = sphi %s730_s13, %s893_s13   ;;  %s691_s12 = sphi %s728_s12, %s892_s12  }
   0x4   : > { %s753_s18 = sadd.s32 1, %s703_s15   ;;  %s91_s19 = sadd.s32 1, %s699_s14 }
   0x5   : > { %s88_s20 = ssub.s32 %s703_s15, %s753_s18  ;;  %p101_p0 = scmp.ne.s32.totalorder %s699_s14, %s695_s13 }
   0x6   : > { %p89_p1 = scmp.eq.s32.totalorder %s88_s20, 0  ;;  %p102_p2 = scmp.eq.s32.totalorder %s749_s16, 1 }
   0x7   : > { %p107_p3 = scmp.ne.s32.totalorder %s695_s13, %s691_s12  ;;  %p108_p4 = scmp.eq.s32.totalorder %s521_s17, 1 }
   0x8   : > { %s764_s21 = scalar_select %p89_p1, %s699_s14, %s91_s19  }
   0x9   : > { %p766_p5 = por %p102_p2, %p101_p0  ;;  %p770_p6 = por %p108_p4, %p107_p3 }
   0xa   : > { %p524_p7 = scmp.ge.s32.totalorder %s703_s15, 1  ;;  %p139_p8 = scmp.lt.s32.totalorder %s703_s15, 3 }
   0xc   : > { %p140_p9 = pnand %p524_p7, %p139_p8 }
   0xd   : > { %p162_p10 = scmp.lt.s32.totalorder (!%p140_p9), %s749_s16, 1  ;;  %s546_s25 = sshll.u32 (!%p140_p9), %s749_s16, 7 }
   0xe   : > { %143 = sbr.rel (%p140_p9) target bundleno = 952 (0x3b8), region = 32  ;;  %s844_s30 = scalar_lea.hbm (!%p140_p9), %s889_s3, %s546_s25 }
  0x13   : > { %v529_v0 = vld [vmem:[%s887_s1 + $0x30] sm:$0xff]  ;;  %v530_v1 = vld [vmem:[%s887_s1 + $0x38] sm:$0xff]  ;;  %v705_v3 = vmov 0.0   ;;  %v527_v6 = vld [vmem:[%s887_s1 + $0x20] sm:$0xff]  ;;  %vm706_vm0 = vmmov 0   ;;  %s163_s19 = scalar_select %p162_p10, %s749_s16, 1 }
  0x14   : > { %v171_v2 = vld [vmem:[%s887_s1 + $0x10] sm:$0xff]  ;;  %570 = vmatprep.subr.bf16.mxu1 %v705_v3  ;;  %v181_v4 = vpack.c.bf16 %v530_v1, %v529_v0  ;;  %562 = vmatprep.subr.bf16.mxu0 %v705_v3  ;;  %v172_v5 = vld [vmem:[%s887_s1 + $0x18] sm:$0xff]  ;;  %v528_v7 = vld [vmem:[%s887_s1 + $0x28] sm:$0xff]  ;;  %vm196_vm1 = vcmask 261120   ;;  %vm339_vm2 = vcmask 130048   ;;  %vm387_vm3 = vcmask 64512  }
  0x15   : > { %v174_v8 = vpack.c.bf16 %v172_v5, %v171_v2  ;;  %574 = vmatprep.mubr.msk.bf16.mxu1 %vm706_vm0, %v705_v3  ;;  %v169_v9 = vld [vmem:[%s887_s1] sm:$0xff]  ;;  %v170_v10 = vld [vmem:[%s887_s1 + $0x8] sm:$0xff]  ;;  %566 = vmatprep.mubr.msk.bf16.mxu0 %vm706_vm0, %v705_v3  ;;  %v180_v11 = vpack.c.bf16 %v528_v7, %v527_v6  ;;  %s526_s20 = sshll.u32 %s163_s19, 3  ;;  %v533_v30 = vld [vmem:[%s887_s1 + $0x50] sm:$0xff]  ;;  %vm403_vm4 = vcmask 1043456   ;;  %s707_s16 = smov [#allocation2]  }
  0x16   : > { %571 = vmatpush3.bf16.msra.mxu1 %v181_v4  ;;  %v173_v12 = vpack.c.bf16 %v170_v10, %v169_v9  ;;  %s165_s26 = scalar_lea.vmem %s886_s0, %s526_s20  ;;  %v538_v15 = vld [vmem:[%s888_s2 + $0x1] ss:$0 sm:$0xff]  ;;  %v535_v20 = vld [vmem:[%s888_s2] ss:$0 sm:$0xff]  ;;  %v534_v31 = vld [vmem:[%s887_s1 + $0x58] sm:$0xff]  ;;  %s159_s20 = sand.u32 1, %s695_s13  }
  0x17   : > { %563 = vmatpush3.bf16.msra.mxu0 %v174_v8  ;;  %572 = vmatprep.subr.bf16.mxu1 %v705_v3  ;;  %v167_v13 = vld [vmem:[%s165_s26] sm:$0xff]  ;;  %v188_v33 = vpack.c.bf16 %v534_v31, %v533_v30  ;;  %v532_v34 = vld [vmem:[%s887_s1 + $0x48] sm:$0xff]  ;;  %s525_s24 = sshll.u32 %s159_s20, 3  ;;  %s449_s4 = scalar_lea.sflag [#allocation3], %s159_s20 }
  0x18   : > { %564 = vmatprep.subr.bf16.mxu0 %v705_v3  ;;  %v168_v14 = vpack.c.bf16 %v167_v13, %v167_v13  ;;  %v531_v32 = vld [vmem:[%s887_s1 + $0x40] sm:$0xff]  ;;  %s161_s26 = scalar_lea.vmem [#allocation2], %s525_s24  ;;  %s647_s6 = sshll.u32 %s707_s16, 4  ;;  %s648_s6 = int_to_ptr.vmem [resolvable:$false] %s647_s6 }
  0x19   : > { %v187_v35 = vpack.c.bf16 %v532_v34, %v531_v32  ;;  %v541_v47 = vld [vmem:[%s888_s2 + $0x2] ss:$0 sm:$0xff]  ;;  %s462_s27 = sshll.u32 %s161_s26, 4  ;;  %s649_s7 = scalar_lea.vmem %s648_s6, 256  ;;  %s846_s27 = int_to_ptr.vmem [resolvable:$true] %s462_s27 }
  0x1a   : > { %573 = vmatpush3.bf16.msra.mxu1 %v180_v11  ;;  %s643_s5 = scalar_lea.vmem %s846_s27, 128  ;;  %p650_p0 = scmp.lt.s32.totalorder %s846_s27, %s648_s6 }
  0x1b   : > { %565 = vmatpush3.bf16.msra.mxu0 %v173_v12  ;;  %586 = vmatprep.subr.bf16.mxu1 %v705_v3  ;;  %p644_p11 = scmp.ne.s32.totalorder %s846_s27, %s643_s5  ;;  %p651_p1 = scmp.lt.s32.totalorder %s649_s7, %s643_s5 }
  0x1c   : > { %578 = vmatprep.subr.bf16.mxu0 %v705_v3 }
  0x1d   : > { %575 = vmatmul.mubr.msk.bf16.vlgmr.msra.gmra.mxu1 %vm196_vm1, %v168_v14  ;;  %p645_p12 = pnand %p644_p11, %p766_p5  ;;  %p652_p2 = por %p651_p1, %p650_p0 }
  0x1e   : > { %567 = vmatmul.mubr.msk.bf16.vlgmr.msra.gmra.mxu0 %vm196_vm1, %v168_v14  ;;  %588 = vmatprep.mubr.msk.bf16.mxu1 %vm706_vm0, %v705_v3 }
  0x1f   : > { %582 = vmatprep.mubr.msk.bf16.mxu0 %vm706_vm0, %v705_v3  ;;  %579 = vmatpush3.bf16.msra.mxu0 %v188_v33  ;;  %p646_p13 = pneg %p645_p12 }
  0x20   : > { %580 = vmatprep.subr.bf16.mxu0 %v705_v3 }
  0x21   : > { %p653_p3 = pnand %p652_p2, %p646_p13 }
  0x23   : > { %581 = vmatpush3.bf16.msra.mxu0 %v187_v35 }
  0x24   : > { %592 = vmatprep.subr.bf16.mxu0 %v705_v3 }
  0x26   : > { %583 = vmatmul.mubr.msk.bf16.vlgmr.msra.gmra.mxu0 %vm196_vm1, %v168_v14 }
  0x27   : > { %594 = vmatprep.mubr.msk.bf16.mxu0 %vm706_vm0, %v705_v3 }
  0xdd   : > { %v282_v16 = vpop.f32.mrf.mxu1 }
  0xde   : > { %v283_v17 = vadd.f32 %v538_v15, %v282_v16  ;;  %v234_v18 = vpop.f32.mrf.mxu0 }
  0xdf   : > { %v576_v19 = vpop.f32.mrf.mxu1  ;;  %v235_v25 = vadd.f32 %v535_v20, %v234_v18 }
  0xe0   : > { %v337_v21 = vpack.c.bf16 %v283_v17, %v283_v17  ;;  %v568_v22 = vpop.f32.mrf.mxu0 }
  0xe1   : > { %v285_v23 = vpop.f32.mrf.mxu1  ;;  %v336_v29 = vpack.c.bf16 %v235_v25, %v235_v25 }
  0xe2   : > { %v344_v24 = vsel %vm339_vm2, %v337_v21, 0  ;;  %v237_v26 = vpop.f32.mrf.mxu0 }
  0xe3   : > { %v577_v27 = vpop.f32.mrf.mxu1  ;;  %587 = vmatpush3.bf16.xpose.msra.mxu1 %v344_v24 }
  0xe4   : > { %v569_v28 = vpop.f32.mrf.mxu0 }
  0xe6   : > { %v330_v48 = vpop.f32.mrf.mxu0 }
  0xe7   : > { %v331_v49 = vadd.f32 %v541_v47, %v330_v48 }
  0xe8   : > { %v584_v50 = vpop.f32.mrf.mxu0 }
  0xe9   : > { %v338_v51 = vpack.c.bf16 %v331_v49, %v331_v49 }
  0xea   : > { %589 = vmatmul.mubr.msk.bf16.vlgmr.msra.gmra.mxu1 %vm339_vm2, %v336_v29  ;;  %v333_v52 = vpop.f32.mrf.mxu0 }
  0xeb   : > { %v405_v53 = vsel %vm403_vm4, %v338_v51, 0 }
  0xec   : > { %v585_v54 = vpop.f32.mrf.mxu0  ;;  %593 = vmatpush3.bf16.msra.mxu0 %v405_v53 }
 0x1aa   : > { %v380_v36 = vpop.f32.mrf.mxu1 }
 0x1ab   : > { %v386_v37 = vmul.f32 0.25, %v380_v36 }
 0x1ac   : > { %v590_v38 = vpop.f32.mrf.mxu1 }
 0x1ad   : > { %v388_v39 = vsel %vm387_vm3, %v386_v37, -inf }
 0x1ae   : > { %389 = vmax.xlane.f32.xlu0 %v388_v39  ;;  %v383_v40 = vpop.f32.mrf.mxu1 }
 0x1b0   : > { %v591_v41 = vpop.f32.mrf.mxu1 }
 0x237   : > { %v390_v42 = vpop.xlane.xlu0 %389 }
 0x238   : > { %v391_v43 = vsub.f32 %v386_v37, %v390_v42 }
 0x23a   : > { %v392_v44 = vmul.f32 1.442695, %v391_v43 }
 0x23c   : > { %639 = vpow2.f32 %v392_v44 }
 0x249   : > { %v640_v45 = vpop.eup %639 }
 0x24a   : > { %v394_v46 = vsel %vm387_vm3, %v640_v45, 0.0 }
 0x24b   : > { %395 = vadd.xlane.f32.xlu0 %v394_v46 }
 0x2d4   : > { %v396_v55 = vpop.xlane.xlu0 %395 }
 0x2d5   : > { %641 = vrcp.f32 %v396_v55 }
 0x2e2   : > { %v642_v56 = vpop.eup %641 }
 0x2e3   : > { %v398_v57 = vmul.f32 %v642_v56, %v640_v45 }
 0x2e5   : > { %v399_v58 = vpack.c.bf16 %v398_v57, %v398_v57 }
 0x2e7   : > { %595 = vmatmul.mubr.msk.bf16.vlgmr.msra.gmra.mxu0 %vm387_vm3, %v399_v58 }
 0x3a7   : > { %v441_v59 = vpop.f32.mrf.mxu0 }
 0x3a8   : > { %447 = vst.msk [vmem:[%s161_s26] sm:$0xff] %vm339_vm2, %v441_v59 }
 0x3a9   : > { %v596_v60 = vpop.f32.mrf.mxu0 }
 0x3aa   : > { %656 = shalt.err (!%p653_p3)
}
 0x3ab   : > { %s657_s8 = scalar_lea.hbm %s844_s30, 128  ;;  %s661_s11 = scalar_lea.hbm %s889_s3, 256 }
 0x3ac   : > { %p658_p4 = scmp.ne.s32.totalorder %s844_s30, %s657_s8  ;;  %p662_p9 = scmp.lt.s32.totalorder %s844_s30, %s889_s3 }
 0x3ad   : > { %p663_p10 = scmp.lt.s32.totalorder %s661_s11, %s657_s8 }
 0x3ae   : > { %p659_p7 = pnand %p658_p4, %p766_p5 }
 0x3af   : > { %p664_p11 = por %p663_p10, %p662_p9 }
 0x3b0   : > { %p660_p8 = pneg %p659_p7 }
 0x3b2   : > { %p665_p12 = pnand %p664_p11, %p660_p8 }
 0x3b4   : > { %668 = shalt.err (!%p665_p12)
}
 0x3b5   : > { %598 = dma.vmem_to_hbm [thread:$0]  (%p766_p5), %s846_s27, 128, %s844_s30, %s449_s4   ;;  %v444_v61 = vpop.f32.mrf.mxu0 }
 0x3b7   : > { %v597_v62 = vpop.f32.mrf.mxu0 }
 0x3b8 PF: > { %p604_p13 = scmp.ge.s32.totalorder %s703_s15, 2  ;;  %s474_s20 = sand.u32 1, %s691_s12  }
 0x3b9   : > { %s475_s24 = scalar_lea.sflag [#allocation3], %s474_s20 }
 0x3ba   : > { %p601_p0 = pnand %p604_p13, %p770_p6 }
 0x3bc   : > { %p602_p1 = pneg %p601_p0 }
 0x3be   : > { %686 = dma.done.wait (%p602_p1), %s475_s24, 128  }
 0x3bf   : > { %688 = vsyncadd (%p602_p1), %s475_s24, 4294967168  ;;  %p13_p5 = scmp.ge.s32.totalorder %s753_s18, 4   ;;  %s892_s12 = smov %s695_s13 }
 0x3c0   : > { %s893_s13 = smov %s699_s14  ;;  %s894_s14 = smov %s764_s21 }
 0x3c1   : > { %s895_s15 = smov %s753_s18  ;;  %15 = sbr.rel (!%p13_p5) target bundleno = 3 (0x3), region = 71 }
 0x3c6   :  { %480 = vsyncpa [#allocation3], 1 }
 0x3c7   :  { %482 = vsyncpa [#allocation3 + $0x1], 1 }

</bundles_post_ra>
